<compile_context>
chip_gen: v5e
topology: v5e:2x2
jax: 0.10.0
libtpu: 0.0.40
codegen_flags: <defaults>
</compile_context>

<pallas_src>
import functools

import jax
import jax.numpy as jnp
from jax import lax
from jax.experimental import pallas as pl
from jax.experimental.pallas import tpu as pltpu

EPS = 1e-8


def _ff_kernel(xin_ref, sel_ref,
               dmean_ref, dstd_ref,
               w1t_ref, b1_ref,
               w2t_ref, b2_ref,
               woutt_ref, bout_ref,
               next_obs_ref, delta_ref):
    """Feature-major MLP forward for one batch tile.

    xin_ref : (tile_n, in_dim) row-major input block ([obs | acs], raw).
    outputs : (ob_dim, tile_n) feature-major, batch on the lane axis.
    """
    x = xin_ref[...]                                          # (tile_n, in_dim)

    # Contract on the feature dim of BOTH operands ("A @ B^T", the q@k.T pattern):
    # result is feature-major (rows = features, lanes = batch).  Keeps the layout
    # change on the MXU instead of materializing an unaligned transpose.
    def nt(a, b):
        return lax.dot_general(a, b, (((1,), (1,)), ((), ())),
                               preferred_element_type=jnp.float32)

    # Normalization is pre-folded into w1t/b1, so raw inputs go straight to the MXU.
    h = jnp.tanh(nt(w1t_ref[...], x) + b1_ref[...])           # (size, tile_n)
    h = jnp.tanh(jnp.dot(w2t_ref[...], h,
                         preferred_element_type=jnp.float32) + b2_ref[...])
    delta_n = (jnp.dot(woutt_ref[...], h,
                       preferred_element_type=jnp.float32)
               + bout_ref[...])                               # (ob_dim, tile_n)

    # obs, feature-major, via a 0/1 selector matmul (MXU "transpose"; MXU is ~idle).
    obs_t = nt(sel_ref[...], x)                               # (ob_dim, tile_n)

    # next_obs = obs + unnormalize(delta_n) — all lane-dense elementwise.
    next_obs_ref[...] = (obs_t + delta_n * dstd_ref[...]
                         + dmean_ref[...]).astype(next_obs_ref.dtype)
    delta_ref[...] = delta_n.astype(delta_ref.dtype)


def prepare_ff_params(obs_mean, obs_std, acs_mean, acs_std,
                      delta_mean, delta_std, params):
    """One-time preparation (redo only when weights / statistics change).

    Folds input normalization into layer 1, transposes weights to the
    feature-major form the kernel consumes, reshapes biases / stats to
    (features, 1) columns and builds the obs selector matrix.
    """
    f32 = jnp.float32
    w1o, w1a, b1, w2, b2, wout, bout = params
    ob_dim = w1o.shape[0]
    ac_dim = w1a.shape[0]
    in_dim = ob_dim + ac_dim

    inv_obs_std = 1.0 / (obs_std.astype(f32) + EPS)
    inv_acs_std = 1.0 / (acs_std.astype(f32) + EPS)
    w1o_f = w1o.astype(f32) * inv_obs_std[:, None]            # (ob_dim, size)
    w1a_f = w1a.astype(f32) * inv_acs_std[:, None]            # (ac_dim, size)
    w1t = jnp.concatenate([w1o_f, w1a_f], axis=0).T           # (size, in_dim)
    b1_f = (b1.astype(f32)
            - (obs_mean.astype(f32) * inv_obs_std) @ w1o.astype(f32)
            - (acs_mean.astype(f32) * inv_acs_std) @ w1a.astype(f32))

    col = lambda v: v.reshape(-1, 1).astype(f32)
    sel = jnp.eye(ob_dim, in_dim, dtype=f32)                  # picks obs cols of x

    return (sel,
            col(delta_mean), col(delta_std),
            w1t, col(b1_f),
            w2.astype(f32).T, col(b2),
            wout.astype(f32).T, col(bout))


def ff_forward_prepared(obs, acs, prepared, *, tile_n=1024,
                        feature_major_outputs=False):
    """Per-call forward.  `prepared` comes from prepare_ff_params().

    Returns (next_obs_pred, delta_pred_normalized).  By default the outputs are
    returned in the module's (n, ob_dim) layout; pass feature_major_outputs=True
    to keep the kernel's lane-dense (ob_dim, n) layout for on-TPU consumers.
    """
    f32 = jnp.float32
    n, ob_dim = obs.shape
    _, ac_dim = acs.shape
    in_dim = ob_dim + ac_dim

    (sel, dmean, dstd, w1t, b1c, w2t, b2c, woutt, boutc) = prepared
    size = w1t.shape[0]
    assert w1t.shape[1] == in_dim and sel.shape == (ob_dim, in_dim)
    assert tile_n % 128 == 0, "tile_n must be a multiple of 128 (lane constraint)"

    # Single pre-concatenated input stream (removes the separate, heavily padded
    # acs DMA and the in-kernel lane concat).
    xin = jnp.concatenate([obs.astype(f32), acs.astype(f32)], axis=1)   # (n, in_dim)

    grid = (pl.cdiv(n, tile_n),)
    full = lambda shape: pl.BlockSpec(shape, lambda i: (0,) * len(shape))
    in_specs = [
        pl.BlockSpec((tile_n, in_dim), lambda i: (i, 0)),   # xin, row-major blocks
        full((ob_dim, in_dim)),                             # obs selector
        full((ob_dim, 1)), full((ob_dim, 1)),               # delta_mean, delta_std
        full((size, in_dim)), full((size, 1)),              # W1^T (norm-folded), b1
        full((size, size)), full((size, 1)),                # W2^T, b2
        full((ob_dim, size)), full((ob_dim, 1)),            # Wout^T, bout
    ]
    # Two lane-dense feature-major outputs: blocks (ob_dim, tile_n) of (ob_dim, n).
    out_spec = pl.BlockSpec((ob_dim, tile_n), lambda i: (0, i))
    out_shape = (jax.ShapeDtypeStruct((ob_dim, n), f32),
                 jax.ShapeDtypeStruct((ob_dim, n), f32))

    flops = 2 * n * (size * in_dim + size * size + ob_dim * size + ob_dim * in_dim) \
        + 4 * n * ob_dim
    bytes_accessed = 4 * (n * in_dim + 2 * n * ob_dim
                          + size * in_dim + size * size + ob_dim * size
                          + ob_dim * in_dim + 2 * size + 3 * ob_dim)

    next_fm, delta_fm = pl.pallas_call(
        _ff_kernel,
        grid=grid,
        in_specs=in_specs,
        out_specs=(out_spec, out_spec),
        out_shape=out_shape,
        compiler_params=pltpu.CompilerParams(
            dimension_semantics=("parallel",)),
        cost_estimate=pl.CostEstimate(
            flops=flops,
            transcendentals=2 * n * size,
            bytes_accessed=bytes_accessed),
    )(xin, *prepared)

    if feature_major_outputs:
        return next_fm, delta_fm                 # (ob_dim, n), lane-dense
    # Match the original module layout (tiny (ob_dim, n) transposes in the wrapper).
    return next_fm.T, delta_fm.T


def ff_model_forward(obs, acs, obs_mean, obs_std, acs_mean, acs_std,
                     delta_mean, delta_std, params, *, tile_n=1024):
    """Convenience wrapper matching FFModel.forward's argument list."""
    prepared = prepare_ff_params(obs_mean, obs_std, acs_mean, acs_std,
                                 delta_mean, delta_std, params)
    return ff_forward_prepared(obs, acs, prepared, tile_n=tile_n)


def reference_forward(obs, acs, obs_mean, obs_std, acs_mean, acs_std,
                      delta_mean, delta_std, params):
    """Pure-JAX reference with the original (un-folded) normalization."""
    w1o, w1a, b1, w2, b2, wout, bout = params
    obs_n = (obs - obs_mean) / (obs_std + EPS)
    acs_n = (acs - acs_mean) / (acs_std + EPS)
    h = jnp.tanh(obs_n @ w1o + acs_n @ w1a + b1)
    h = jnp.tanh(h @ w2 + b2)
    delta_n = h @ wout + bout
    next_obs = obs + delta_n * delta_std + delta_mean
    return next_obs, delta_n


def init_params(key, ob_dim, ac_dim, size):
    """Deterministic synthetic MLP parameters (n_layers=2, tanh hidden, linear out)."""
    ks = jax.random.split(key, 7)
    s = 0.1
    w1o = s * jax.random.normal(ks[0], (ob_dim, size), jnp.float32)
    w1a = s * jax.random.normal(ks[1], (ac_dim, size), jnp.float32)
    b1 = s * jax.random.normal(ks[2], (size,), jnp.float32)
    w2 = s * jax.random.normal(ks[3], (size, size), jnp.float32)
    b2 = s * jax.random.normal(ks[4], (size,), jnp.float32)
    wout = s * jax.random.normal(ks[5], (size, ob_dim), jnp.float32)
    bout = s * jax.random.normal(ks[6], (ob_dim,), jnp.float32)
    return (w1o, w1a, b1, w2, b2, wout, bout)


if __name__ == "__main__":
    # Shapes consistent with the module: ob_dim=16, ac_dim=8, n_layers=2, size=32.
    # batch=1024 with tile_n=256 -> grid of 4 (>=2 steps per v7x TensorCore).
    batch, ob_dim, ac_dim, size = 1024, 16, 8, 32
    tile_n = 256

    key = jax.random.PRNGKey(0)
    k_obs, k_acs, k_stat, k_par = jax.random.split(key, 4)

    obs = jax.random.normal(k_obs, (batch, ob_dim), jnp.float32)
    acs = jax.random.normal(k_acs, (batch, ac_dim), jnp.float32)

    ks = jax.random.split(k_stat, 6)
    obs_mean = jax.random.normal(ks[0], (ob_dim,), jnp.float32)
    obs_std = jnp.abs(jax.random.normal(ks[1], (ob_dim,), jnp.float32)) + 0.5
    acs_mean = jax.random.normal(ks[2], (ac_dim,), jnp.float32)
    acs_std = jnp.abs(jax.random.normal(ks[3], (ac_dim,), jnp.float32)) + 0.5
    delta_mean = jax.random.normal(ks[4], (ob_dim,), jnp.float32)
    delta_std = jnp.abs(jax.random.normal(ks[5], (ob_dim,), jnp.float32)) + 0.5

    params = init_params(k_par, ob_dim, ac_dim, size)

    # One-time preparation (per statistics / weight update), outside the hot path.
    prepared = prepare_ff_params(obs_mean, obs_std, acs_mean, acs_std,
                                 delta_mean, delta_std, params)
    fwd = jax.jit(functools.partial(ff_forward_prepared, tile_n=tile_n))

    next_obs, delta_n = fwd(obs, acs, prepared)
    jax.block_until_ready((next_obs, delta_n))

    ref_next, ref_delta = reference_forward(
        obs, acs, obs_mean, obs_std, acs_mean, acs_std,
        delta_mean, delta_std, params)

    # delta path is identical in structure to the previously validated kernel.
    assert jnp.allclose(delta_n, ref_delta, atol=1e-5, rtol=1e-5)
    # next_obs additionally routes obs through the MXU selector matmul; allow a
    # slightly looser atol in case the f32 matmul path uses 3-pass bf16 emulation.
    assert jnp.allclose(next_obs, ref_next, atol=5e-5, rtol=1e-5)

    print("KERNEL_OK")
</pallas_src>

<mosaic_0001>
module attributes {stable_mosaic.version = 11 : i64} {
  func.func @_ff_kernel(%arg0: i32, %arg1: memref<256x24xf32, #tpu.memory_space<vmem>>, %arg2: memref<16x24xf32, #tpu.memory_space<vmem>>, %arg3: memref<16x1xf32, #tpu.memory_space<vmem>>, %arg4: memref<16x1xf32, #tpu.memory_space<vmem>>, %arg5: memref<32x24xf32, #tpu.memory_space<vmem>>, %arg6: memref<32x1xf32, #tpu.memory_space<vmem>>, %arg7: memref<32x32xf32, #tpu.memory_space<vmem>>, %arg8: memref<32x1xf32, #tpu.memory_space<vmem>>, %arg9: memref<16x32xf32, #tpu.memory_space<vmem>>, %arg10: memref<16x1xf32, #tpu.memory_space<vmem>>, %arg11: memref<16x256xf32, #tpu.memory_space<vmem>>, %arg12: memref<16x256xf32, #tpu.memory_space<vmem>>) attributes {dimension_semantics = [#tpu.dimension_semantics<parallel>], iteration_bounds = array<i64: 4>, scalar_prefetch = 0 : i64, scratch_operands = 0 : i64, tpu.core_type = #tpu.core_type<tc>, window_params = [{transform_indices = @transform_0, window_bounds = array<i64: 256, 24>}, {pipeline_mode = #tpu.pipeline_mode<synchronous>, transform_indices = @transform_1, window_bounds = array<i64: 16, 24>}, {pipeline_mode = #tpu.pipeline_mode<synchronous>, transform_indices = @transform_2, window_bounds = array<i64: 16, 1>}, {pipeline_mode = #tpu.pipeline_mode<synchronous>, transform_indices = @transform_3, window_bounds = array<i64: 16, 1>}, {pipeline_mode = #tpu.pipeline_mode<synchronous>, transform_indices = @transform_4, window_bounds = array<i64: 32, 24>}, {pipeline_mode = #tpu.pipeline_mode<synchronous>, transform_indices = @transform_5, window_bounds = array<i64: 32, 1>}, {pipeline_mode = #tpu.pipeline_mode<synchronous>, transform_indices = @transform_6, window_bounds = array<i64: 32, 32>}, {pipeline_mode = #tpu.pipeline_mode<synchronous>, transform_indices = @transform_7, window_bounds = array<i64: 32, 1>}, {pipeline_mode = #tpu.pipeline_mode<synchronous>, transform_indices = @transform_8, window_bounds = array<i64: 16, 32>}, {pipeline_mode = #tpu.pipeline_mode<synchronous>, transform_indices = @transform_9, window_bounds = array<i64: 16, 1>}, {transform_indices = @transform_10, window_bounds = array<i64: 16, 256>}, {transform_indices = @transform_11, window_bounds = array<i64: 16, 256>}]} {
    %c0 = arith.constant 0 : index
    %c0_0 = arith.constant 0 : index
    %0 = vector.load %arg1[%c0, %c0_0] : memref<256x24xf32, #tpu.memory_space<vmem>>, vector<256x24xf32>
    %c0_1 = arith.constant 0 : index
    %c0_2 = arith.constant 0 : index
    %1 = vector.load %arg5[%c0_1, %c0_2] : memref<32x24xf32, #tpu.memory_space<vmem>>, vector<32x24xf32>
    %cst = arith.constant dense<0.000000e+00> : vector<32x256xf32>
    %2 = tpu.matmul %1, %0, %cst {dimension_numbers = #tpu.dot_dimension_numbers<[1], [1], [0], [0], [0, 0, 1, 0], [], []>} : vector<32x24xf32>, vector<256x24xf32>, vector<32x256xf32> -> vector<32x256xf32>
    %c0_3 = arith.constant 0 : index
    %c0_4 = arith.constant 0 : index
    %3 = vector.load %arg6[%c0_3, %c0_4] : memref<32x1xf32, #tpu.memory_space<vmem>>, vector<32x1xf32>
    %4 = vector.broadcast %3 : vector<32x1xf32> to vector<32x256xf32>
    %5 = arith.addf %2, %4 : vector<32x256xf32>
    %6 = math.tanh %5 : vector<32x256xf32>
    %c0_5 = arith.constant 0 : index
    %c0_6 = arith.constant 0 : index
    %7 = vector.load %arg7[%c0_5, %c0_6] : memref<32x32xf32, #tpu.memory_space<vmem>>, vector<32x32xf32>
    %cst_7 = arith.constant dense<0.000000e+00> : vector<32x256xf32>
    %8 = tpu.matmul %7, %6, %cst_7 {dimension_numbers = #tpu.dot_dimension_numbers<[1], [0], [0], [1], [0, 0, 1, 1], [], []>} : vector<32x32xf32>, vector<32x256xf32>, vector<32x256xf32> -> vector<32x256xf32>
    %c0_8 = arith.constant 0 : index
    %c0_9 = arith.constant 0 : index
    %9 = vector.load %arg8[%c0_8, %c0_9] : memref<32x1xf32, #tpu.memory_space<vmem>>, vector<32x1xf32>
    %10 = vector.broadcast %9 : vector<32x1xf32> to vector<32x256xf32>
    %11 = arith.addf %8, %10 : vector<32x256xf32>
    %12 = math.tanh %11 : vector<32x256xf32>
    %c0_10 = arith.constant 0 : index
    %c0_11 = arith.constant 0 : index
    %13 = vector.load %arg9[%c0_10, %c0_11] : memref<16x32xf32, #tpu.memory_space<vmem>>, vector<16x32xf32>
    %cst_12 = arith.constant dense<0.000000e+00> : vector<16x256xf32>
    %14 = tpu.matmul %13, %12, %cst_12 {dimension_numbers = #tpu.dot_dimension_numbers<[1], [0], [0], [1], [0, 0, 1, 1], [], []>} : vector<16x32xf32>, vector<32x256xf32>, vector<16x256xf32> -> vector<16x256xf32>
    %c0_13 = arith.constant 0 : index
    %c0_14 = arith.constant 0 : index
    %15 = vector.load %arg10[%c0_13, %c0_14] : memref<16x1xf32, #tpu.memory_space<vmem>>, vector<16x1xf32>
    %16 = vector.broadcast %15 : vector<16x1xf32> to vector<16x256xf32>
    %17 = arith.addf %14, %16 : vector<16x256xf32>
    %c0_15 = arith.constant 0 : index
    %c0_16 = arith.constant 0 : index
    %18 = vector.load %arg2[%c0_15, %c0_16] : memref<16x24xf32, #tpu.memory_space<vmem>>, vector<16x24xf32>
    %cst_17 = arith.constant dense<0.000000e+00> : vector<16x256xf32>
    %19 = tpu.matmul %18, %0, %cst_17 {dimension_numbers = #tpu.dot_dimension_numbers<[1], [1], [0], [0], [0, 0, 1, 0], [], []>} : vector<16x24xf32>, vector<256x24xf32>, vector<16x256xf32> -> vector<16x256xf32>
    %c0_18 = arith.constant 0 : index
    %c0_19 = arith.constant 0 : index
    %20 = vector.load %arg4[%c0_18, %c0_19] : memref<16x1xf32, #tpu.memory_space<vmem>>, vector<16x1xf32>
    %21 = vector.broadcast %20 : vector<16x1xf32> to vector<16x256xf32>
    %22 = arith.mulf %17, %21 : vector<16x256xf32>
    %23 = arith.addf %19, %22 : vector<16x256xf32>
    %c0_20 = arith.constant 0 : index
    %c0_21 = arith.constant 0 : index
    %24 = vector.load %arg3[%c0_20, %c0_21] : memref<16x1xf32, #tpu.memory_space<vmem>>, vector<16x1xf32>
    %25 = vector.broadcast %24 : vector<16x1xf32> to vector<16x256xf32>
    %26 = arith.addf %23, %25 : vector<16x256xf32>
    %c0_22 = arith.constant 0 : index
    %c0_23 = arith.constant 0 : index
    %27 = vector.load %arg11[%c0_22, %c0_23] : memref<16x256xf32, #tpu.memory_space<vmem>>, vector<16x256xf32>
    tpu.vector_store %arg11[%c0_22, %c0_23], %26 {strides = array<i32>} : memref<16x256xf32, #tpu.memory_space<vmem>>, vector<16x256xf32>,
    %c0_24 = arith.constant 0 : index
    %c0_25 = arith.constant 0 : index
    %28 = vector.load %arg12[%c0_24, %c0_25] : memref<16x256xf32, #tpu.memory_space<vmem>>, vector<16x256xf32>
    tpu.vector_store %arg12[%c0_24, %c0_25], %17 {strides = array<i32>} : memref<16x256xf32, #tpu.memory_space<vmem>>, vector<16x256xf32>,
    return
  }
  func.func @transform_0(%arg0: i32) -> (i32, i32) {
    %c0_i32 = arith.constant 0 : i32
    %c0_i32_0 = arith.constant 0 : i32
    return %arg0, %c0_i32 : i32, i32
  }
  func.func @transform_1(%arg0: i32) -> (i32, i32) {
    %c0_i32 = arith.constant 0 : i32
    %c0_i32_0 = arith.constant 0 : i32
    %c0_i32_1 = arith.constant 0 : i32
    return %c0_i32, %c0_i32_0 : i32, i32
  }
  func.func @transform_2(%arg0: i32) -> (i32, i32) {
    %c0_i32 = arith.constant 0 : i32
    %c0_i32_0 = arith.constant 0 : i32
    %c0_i32_1 = arith.constant 0 : i32
    return %c0_i32, %c0_i32_0 : i32, i32
  }
  func.func @transform_3(%arg0: i32) -> (i32, i32) {
    %c0_i32 = arith.constant 0 : i32
    %c0_i32_0 = arith.constant 0 : i32
    %c0_i32_1 = arith.constant 0 : i32
    return %c0_i32, %c0_i32_0 : i32, i32
  }
  func.func @transform_4(%arg0: i32) -> (i32, i32) {
    %c0_i32 = arith.constant 0 : i32
    %c0_i32_0 = arith.constant 0 : i32
    %c0_i32_1 = arith.constant 0 : i32
    return %c0_i32, %c0_i32_0 : i32, i32
  }
  func.func @transform_5(%arg0: i32) -> (i32, i32) {
    %c0_i32 = arith.constant 0 : i32
    %c0_i32_0 = arith.constant 0 : i32
    %c0_i32_1 = arith.constant 0 : i32
    return %c0_i32, %c0_i32_0 : i32, i32
  }
  func.func @transform_6(%arg0: i32) -> (i32, i32) {
    %c0_i32 = arith.constant 0 : i32
    %c0_i32_0 = arith.constant 0 : i32
    %c0_i32_1 = arith.constant 0 : i32
    return %c0_i32, %c0_i32_0 : i32, i32
  }
  func.func @transform_7(%arg0: i32) -> (i32, i32) {
    %c0_i32 = arith.constant 0 : i32
    %c0_i32_0 = arith.constant 0 : i32
    %c0_i32_1 = arith.constant 0 : i32
    return %c0_i32, %c0_i32_0 : i32, i32
  }
  func.func @transform_8(%arg0: i32) -> (i32, i32) {
    %c0_i32 = arith.constant 0 : i32
    %c0_i32_0 = arith.constant 0 : i32
    %c0_i32_1 = arith.constant 0 : i32
    return %c0_i32, %c0_i32_0 : i32, i32
  }
  func.func @transform_9(%arg0: i32) -> (i32, i32) {
    %c0_i32 = arith.constant 0 : i32
    %c0_i32_0 = arith.constant 0 : i32
    %c0_i32_1 = arith.constant 0 : i32
    return %c0_i32, %c0_i32_0 : i32, i32
  }
  func.func @transform_10(%arg0: i32) -> (i32, i32) {
    %c0_i32 = arith.constant 0 : i32
    %c0_i32_0 = arith.constant 0 : i32
    return %c0_i32, %arg0 : i32, i32
  }
  func.func @transform_11(%arg0: i32) -> (i32, i32) {
    %c0_i32 = arith.constant 0 : i32
    %c0_i32_0 = arith.constant 0 : i32
    return %c0_i32, %arg0 : i32, i32
  }
}

</mosaic_0001>

<bundles_post_ra>
// kernel: ff_forward_prepared.1
= control target key start
LH: loop header
LB: loop body
LE: loop exit
PB: predicated region body
PF: predicated region fallthrough
CT: control target
= control target key end

     0   :  { %s1836_s0 = inlined_call_operand.vmem [shape: f32[1024,24], index: 0, kind: input, shape index: {}]   ;;  %s1837_s1 = inlined_call_operand.vmem [shape: f32[16,24], index: 1, kind: input, shape index: {}]   ;;  %s1838_s2 = inlined_call_operand.vmem [shape: f32[16,1], index: 2, kind: input, shape index: {}]   ;;  %s1839_s3 = inlined_call_operand.vmem [shape: f32[16,1], index: 3, kind: input, shape index: {}]   ;;  %s1840_s4 = inlined_call_operand.vmem [shape: f32[32,24], index: 4, kind: input, shape index: {}]   ;;  %s1841_s5 = inlined_call_operand.vmem [shape: f32[32,1], index: 5, kind: input, shape index: {}]   ;;  %s1842_s6 = inlined_call_operand.vmem [shape: f32[32,32], index: 6, kind: input, shape index: {}]   ;;  %s1843_s7 = inlined_call_operand.vmem [shape: f32[32,1], index: 7, kind: input, shape index: {}]   ;;  %s1844_s8 = inlined_call_operand.vmem [shape: f32[16,32], index: 8, kind: input, shape index: {}]   ;;  %s1845_s9 = inlined_call_operand.vmem [shape: f32[16,1], index: 9, kind: input, shape index: {}]   ;;  %s1846_s10 = inlined_call_operand.hbm [shape: f32[16,1024], index: 10, kind: output, shape index: {0}]   ;;  %s1847_s11 = inlined_call_operand.hbm [shape: f32[16,1024], index: 11, kind: output, shape index: {1}]  }
   0x1   :  { %1850 = sst [smem:[#allocation8_spill]] %s1836_s0 }
   0x2   :  { %1851 = sst [smem:[#allocation9_spill]] %s1837_s1 }
   0x3   :  { %1852 = sst [smem:[#allocation10_spill]] %s1838_s2 }
   0x4   :  { %1853 = sst [smem:[#allocation11_spill]] %s1839_s3 }
   0x5   :  { %17 = vsyncpa [#allocation3], 0 }
   0x6   :  { %19 = vsyncpa [#allocation3 + $0x1], 0 }
   0x7   :  { %20 = vsyncpa [#allocation5], 0 }
   0x8   :  { %22 = vsyncpa [#allocation5 + $0x1], 0  ;;  %s1392_s17 = smov 0   ;;  %s1394_s18 = smov 0  }
   0x9   :  { %s1396_s19 = smov 0   ;;  %s1398_s20 = smov 0  }
   0xa LB: > { %s1413_s21 = sadd.s32 4294967295, %s1326_s20   ;;  %s1035_s22 = sadd.s32 4294967294, %s1326_s20   ;;  %s1326_s20 = sphi %s1398_s20, %s1865_s20   ;;  %s1322_s19 = sphi %s1396_s19, %s1864_s19   ;;  %s1318_s18 = sphi %s1394_s18, %s1863_s18   ;;  %s1314_s17 = sphi %s1392_s17, %s1862_s17  }
   0xb   : > { %s1417_s23 = sadd.s32 1, %s1326_s20   ;;  %s250_s24 = sadd.s32 1, %s1322_s19 }
   0xc   : > { %s247_s25 = ssub.s32 %s1326_s20, %s1417_s23  ;;  %p260_p0 = scmp.ne.s32.totalorder %s1322_s19, %s1318_s18 }
   0xd   : > { %p248_p1 = scmp.eq.s32.totalorder %s247_s25, 0  ;;  %p261_p2 = scmp.eq.s32.totalorder %s1413_s21, 3 }
   0xe   : > { %p266_p3 = scmp.ne.s32.totalorder %s1318_s18, %s1314_s17  ;;  %p267_p4 = scmp.eq.s32.totalorder %s1035_s22, 3 }
   0xf   : > { %s1428_s26 = scalar_select %p248_p1, %s1322_s19, %s250_s24  }
  0x10   : > { %p1430_p5 = por %p261_p2, %p260_p0  ;;  %p1434_p6 = por %p267_p4, %p266_p3 }
  0x11   : > { %p1038_p7 = scmp.ge.s32.totalorder %s1326_s20, 1  ;;  %p347_p8 = scmp.lt.s32.totalorder %s1326_s20, 5 }
  0x13   : > { %p348_p9 = pnand %p1038_p7, %p347_p8 }
  0x14   : > { %s1041_s29 = sshll.u32 (!%p348_p9), %s1413_s21, 5  ;;  %s1856_s0 = sld [smem:[#allocation8_spill]] (!%p348_p9) }
  0x15   : > { %351 = sbr.rel (%p348_p9) target bundleno = 636 (0x27c), region = 60  ;;  %p393_p10 = scmp.lt.s32.totalorder (!%p348_p9), %s1041_s29, 127 }
  0x16   : > { %s1857_s3 = sld [smem:[#allocation11_spill]] (!%p348_p9) }
  0x17   : > { %s1858_s2 = sld [smem:[#allocation10_spill]] (!%p348_p9) }
  0x18   : > { %s1859_s1 = sld [smem:[#allocation9_spill]] (!%p348_p9) }
  0x1a   : > { %s1867_s29 = smov (!%p393_p10, %s1041_s29), 127  ;;  %vm460_vm0 = vcmask 195584   ;;  %v439_v14 = vld [vmem:[%s1841_s5 + $0x18] sm:$0xff]  ;;  %v1328_v17 = vmov 0   ;;  %v437_v20 = vld [vmem:[%s1841_s5 + $0x8] sm:$0xff]  ;;  %v438_v21 = vld [vmem:[%s1841_s5 + $0x10] sm:$0xff] }
  0x1b   : > { %s1042_s30 = sshll.u32 %s1867_s29, 3  ;;  %1197 = vset.pattern.permute.xlu0 %v1328_v17  ;;  %1198 = vset.pattern.permute.xlu1 %v1328_v17  ;;  %v436_v26 = vld [vmem:[%s1841_s5] sm:$0xff]  ;;  %v640_v27 = vld [vmem:[%s1843_s7 + $0x8] sm:$0xff]  ;;  %v434_v45 = vld [vmem:[%s1840_s4 + $0x10] sm:$0xff]  ;;  %vm663_vm1 = vcmask 261120   ;;  %s1849_s29 = sshll.u32 %s1413_s21, 4 }
  0x1c   : > { %s1444_s14 = scalar_lea.vmem %s1856_s0, %s1042_s30  ;;  %457 = vperm.xlu0 %1197, %v439_v14   ;;  %1199 = vset.pattern.permute.xlu2 %v1328_v17  ;;  %v639_v32 = vld [vmem:[%s1843_s7] sm:$0xff]  ;;  %v745_v33 = vld [vmem:[%s1845_s9 + $0x8] sm:$0xff]  ;;  %v435_v46 = vld [vmem:[%s1840_s4 + $0x18] sm:$0xff]  ;;  %s936_s15 = scalar_lea.hbm %s1847_s11, %s1849_s29 }
  0x1d   : > { %v1447_v0 = vld [vmem:[%s1444_s14 + $0x78] sm:$0xff]  ;;  %v1457_v2 = vld [vmem:[%s1444_s14 + $0x70] sm:$0xff]  ;;  %v1467_v4 = vld [vmem:[%s1444_s14 + $0x68] sm:$0xff]  ;;  %447 = vperm.xlu1 %1198, %v437_v20   ;;  %s939_s22 = sshll.u32 %s936_s15, 4  ;;  %s1252_s15 = scalar_lea.hbm %s1847_s11, 128  ;;  %s940_s22 = int_to_ptr.hbm [resolvable:$true] %s939_s22 }
  0x1e   : > { %v1450_v1 = vld [vmem:[%s1444_s14 + $0xf8] sm:$0xff]  ;;  %1043 = vmatpush.xpose.msk.msra.mxu0 %vm460_vm0, %v1447_v0  ;;  %v1460_v3 = vld [vmem:[%s1444_s14 + $0xf0] sm:$0xff]  ;;  %v1470_v5 = vld [vmem:[%s1444_s14 + $0xe8] sm:$0xff] }
  0x1f   : > { %1063 = vmatpush.xpose.msk.msra.mxu1 %vm460_vm0, %v1450_v1  ;;  %v1477_v6 = vld [vmem:[%s1444_s14 + $0x60] sm:$0xff]  ;;  %v1487_v8 = vld [vmem:[%s1444_s14 + $0x58] sm:$0xff]  ;;  %v1497_v10 = vld [vmem:[%s1444_s14 + $0x50] sm:$0xff] }
  0x20   : > { %v1480_v7 = vld [vmem:[%s1444_s14 + $0xe0] sm:$0xff]  ;;  %v1490_v9 = vld [vmem:[%s1444_s14 + $0xd8] sm:$0xff]  ;;  %v1500_v11 = vld [vmem:[%s1444_s14 + $0xd0] sm:$0xff] }
  0x21   : > { %v1507_v12 = vld [vmem:[%s1444_s14 + $0x48] sm:$0xff]  ;;  %v1520_v15 = vld [vmem:[%s1444_s14 + $0x40] sm:$0xff]  ;;  %v1530_v18 = vld [vmem:[%s1444_s14 + $0x38] sm:$0xff] }
  0x22   : > { %1044 = vmatpush.xpose.msk.msra.mxu0 %vm460_vm0, %v1457_v2  ;;  %v1510_v13 = vld [vmem:[%s1444_s14 + $0xc8] sm:$0xff]  ;;  %v1523_v16 = vld [vmem:[%s1444_s14 + $0xc0] sm:$0xff]  ;;  %v1533_v19 = vld [vmem:[%s1444_s14 + $0xb8] sm:$0xff] }
  0x23   : > { %1064 = vmatpush.xpose.msk.msra.mxu1 %vm460_vm0, %v1460_v3  ;;  %v1546_v22 = vld [vmem:[%s1444_s14 + $0x30] sm:$0xff]  ;;  %v1556_v24 = vld [vmem:[%s1444_s14 + $0x28] sm:$0xff]  ;;  %v1572_v28 = vld [vmem:[%s1444_s14 + $0x20] sm:$0xff] }
  0x24   : > { %v1549_v23 = vld [vmem:[%s1444_s14 + $0xb0] sm:$0xff]  ;;  %452 = vperm.xlu0 %1197, %v438_v21   ;;  %v1559_v25 = vld [vmem:[%s1444_s14 + $0xa8] sm:$0xff]  ;;  %v1575_v29 = vld [vmem:[%s1444_s14 + $0xa0] sm:$0xff] }
  0x25   : > { %442 = vperm.xlu1 %1198, %v436_v26   ;;  %v1582_v30 = vld [vmem:[%s1444_s14 + $0x18] sm:$0xff]  ;;  %v1598_v34 = vld [vmem:[%s1444_s14 + $0x10] sm:$0xff]  ;;  %v1608_v36 = vld [vmem:[%s1444_s14 + $0x8] sm:$0xff] }
  0x26   : > { %1045 = vmatpush.xpose.msk.msra.mxu0 %vm460_vm0, %v1467_v4  ;;  %v1585_v31 = vld [vmem:[%s1444_s14 + $0x98] sm:$0xff]  ;;  %v1601_v35 = vld [vmem:[%s1444_s14 + $0x90] sm:$0xff]  ;;  %v1611_v37 = vld [vmem:[%s1444_s14 + $0x88] sm:$0xff] }
  0x27   : > { %1065 = vmatpush.xpose.msk.msra.mxu1 %vm460_vm0, %v1470_v5  ;;  %v810_v38 = vld [vmem:[%s1857_s3] sm:$0xff]  ;;  %v879_v43 = vld [vmem:[%s1858_s2 + $0x8] sm:$0xff]  ;;  %v642_v63 = vld [vmem:[%s1843_s7 + $0x18] sm:$0xff] }
  0x28   : > { %v878_v39 = vld [vmem:[%s1858_s2] sm:$0xff]  ;;  %v433_v44 = vld [vmem:[%s1840_s4 + $0x8] sm:$0xff]  ;;  %660 = vperm.xlu2 %1199, %v642_v63  }
  0x29   : > { %v1624_v40 = vld [vmem:[%s1444_s14] sm:$0xff] }
  0x2a   : > { %1046 = vmatpush.xpose.msk.msra.mxu0 %vm460_vm0, %v1477_v6  ;;  %v1627_v41 = vld [vmem:[%s1444_s14 + $0x80] sm:$0xff]  ;;  %s1773_s14 = sand.u32 1, %s1318_s18  }
  0x2b   : > { %1066 = vmatpush.xpose.msk.msra.mxu1 %vm460_vm0, %v1480_v7  ;;  %v432_v42 = vld [vmem:[%s1840_s4] sm:$0xff]  ;;  %s1848_s25 = sshll.u32 %s1773_s14, 5  ;;  %s908_s24 = scalar_lea.sflag [#allocation5], %s1773_s14 }
  0x2c   : > { %650 = vperm.xlu0 %1197, %v640_v27   ;;  %s391_s30 = scalar_lea.vmem [#allocation4], %s1848_s25  ;;  %s1246_s25 = sshra.s32 %s940_s22, 4  ;;  %s1247_s25 = int_to_ptr.hbm [resolvable:$true] %s1246_s25 }
  0x2d   : > { %645 = vperm.xlu1 %1198, %v639_v32   ;;  %s937_s16 = sshll.u32 %s391_s30, 4  ;;  %s1248_s0 = scalar_lea.hbm %s1247_s25, 32  ;;  %s938_s16 = int_to_ptr.vmem [resolvable:$true] %s937_s16 }
  0x2e   : > { %1047 = vmatpush.xpose.msk.msra.mxu0 %vm460_vm0, %v1487_v8  ;;  %p1249_p11 = scmp.ne.s32.totalorder %s1247_s25, %s1248_s0  ;;  %p1253_p0 = scmp.lt.s32.totalorder %s1247_s25, %s1847_s11 }
  0x2f   : > { %1067 = vmatpush.xpose.msk.msra.mxu1 %vm460_vm0, %v1490_v9  ;;  %p1254_p1 = scmp.lt.s32.totalorder %s1252_s15, %s1248_s0 }
  0x30   : > { %p1250_p12 = pnand %p1249_p11, %p1430_p5 }
  0x31   : > { %p1255_p2 = por %p1254_p1, %p1253_p0 }
  0x32   : > { %1048 = vmatpush.xpose.msk.msra.mxu0 %vm460_vm0, %v1497_v10  ;;  %p1251_p13 = pneg %p1250_p12 }
  0x33   : > { %1068 = vmatpush.xpose.msk.msra.mxu1 %vm460_vm0, %v1500_v11 }
  0x34   : > { %753 = vperm.xlu0 %1197, %v745_v33   ;;  %p1256_p3 = pnand %p1255_p2, %p1251_p13 }
  0x35   : > { %814 = vperm.xlu1 %1198, %v810_v38  }
  0x36   : > { %1049 = vmatpush.xpose.msk.msra.mxu0 %vm460_vm0, %v1507_v12 }
  0x37   : > { %1069 = vmatpush.xpose.msk.msra.mxu1 %vm460_vm0, %v1510_v13 }
  0x3a   : > { %1050 = vmatpush.xpose.msk.msra.mxu0 %vm460_vm0, %v1520_v15 }
  0x3b   : > { %1070 = vmatpush.xpose.msk.msra.mxu1 %vm460_vm0, %v1523_v16 }
  0x3c   : > { %882 = vperm.xlu0 %1197, %v878_v39  }
  0x3d   : > { %887 = vperm.xlu1 %1198, %v879_v43   ;;  %v635_v43 = vld [vmem:[%s1842_s6] sm:$0xff] }
  0x3e   : > { %1051 = vmatpush.xpose.msk.msra.mxu0 %vm460_vm0, %v1530_v18 }
  0x3f   : > { %1071 = vmatpush.xpose.msk.msra.mxu1 %vm460_vm0, %v1533_v19 }
  0x42   : > { %1052 = vmatpush.xpose.msk.msra.mxu0 %vm460_vm0, %v1546_v22 }
  0x43   : > { %1072 = vmatpush.xpose.msk.msra.mxu1 %vm460_vm0, %v1549_v23 }
  0x46   : > { %1053 = vmatpush.xpose.msk.msra.mxu0 %vm460_vm0, %v1556_v24 }
  0x47   : > { %1073 = vmatpush.xpose.msk.msra.mxu1 %vm460_vm0, %v1559_v25 }
  0x4a   : > { %1054 = vmatpush.xpose.msk.msra.mxu0 %vm460_vm0, %v1572_v28 }
  0x4b   : > { %1074 = vmatpush.xpose.msk.msra.mxu1 %vm460_vm0, %v1575_v29 }
  0x4e   : > { %1055 = vmatpush.xpose.msk.msra.mxu0 %vm460_vm0, %v1582_v30 }
  0x4f   : > { %1075 = vmatpush.xpose.msk.msra.mxu1 %vm460_vm0, %v1585_v31 }
  0x52   : > { %1056 = vmatpush.xpose.msk.msra.mxu0 %vm460_vm0, %v1598_v34 }
  0x53   : > { %1076 = vmatpush.xpose.msk.msra.mxu1 %vm460_vm0, %v1601_v35 }
  0x56   : > { %1057 = vmatpush.xpose.msk.msra.mxu0 %vm460_vm0, %v1608_v36 }
  0x57   : > { %1077 = vmatpush.xpose.msk.msra.mxu1 %vm460_vm0, %v1611_v37 }
  0x5a   : > { %1058 = vmatpush.xpose.msk.msra.mxu0 %vm460_vm0, %v1624_v40 }
  0x5b   : > { %1078 = vmatpush.xpose.msk.msra.mxu1 %vm460_vm0, %v1627_v41 }
  0x5d   : > { %1059 = vmatmul.msk.f32.vlgmr.msra.gmra.mxu0 %vm460_vm0, %v432_v42 }
  0x5e   : > { %1079 = vmatmul.msk.f32.vlgmr.msra.gmra.mxu1 %vm460_vm0, %v432_v42 }
  0x65   : > { %1060 = vmatmul.msk.f32.gmra.mxu0 %vm460_vm0, %v433_v44 }
  0x66   : > { %1080 = vmatmul.msk.f32.gmra.mxu1 %vm460_vm0, %v433_v44  ;;  %v636_v44 = vld [vmem:[%s1842_s6 + $0x8] sm:$0xff] }
  0x6d   : > { %1061 = vmatmul.msk.f32.gmra.mxu0 %vm460_vm0, %v434_v45 }
  0x6e   : > { %1081 = vmatmul.msk.f32.gmra.mxu1 %vm460_vm0, %v434_v45 }
  0x75   : > { %1062 = vmatmul.msk.f32.gmra.mxu0 %vm460_vm0, %v435_v46 }
  0x76   : > { %1082 = vmatmul.msk.f32.gmra.mxu1 %vm460_vm0, %v435_v46  ;;  %v641_v46 = vld [vmem:[%s1843_s7 + $0x10] sm:$0xff] }
  0x77   : > { %655 = vperm.xlu2 %1199, %v641_v46  }
  0x8e   : > { %v458_v51 = vpop.permute.xlu0 %457 }
  0x8f   : > { %v448_v54 = vpop.permute.xlu1 %447 }
  0x96   : > { %v453_v55 = vpop.permute.xlu0 %452 }
  0x97   : > { %v443_v14 = vpop.permute.xlu1 %442 }
  0xda   : > { %v586_v47 = vpop.f32.mrf.mxu0 }
  0xdb   : > { %v615_v48 = vpop.f32.mrf.mxu1  ;;  %v587_v20 = vadd.f32 %v586_v47, %v443_v14  ;;  %v637_v47 = vld [vmem:[%s1842_s6 + $0x10] sm:$0xff] }
  0xdc   : > { %v616_v21 = vadd.f32 %v615_v48, %v443_v14  ;;  %v744_v48 = vld [vmem:[%s1845_s9] sm:$0xff] }
  0xdd   : > { %748 = vperm.xlu2 %1199, %v744_v48   ;;  %v743_v48 = vld [vmem:[%s1844_s8 + $0x8] sm:$0xff] }
  0xe2   : > { %v589_v49 = vpop.f32.mrf.mxu0 }
  0xe3   : > { %v618_v50 = vpop.f32.mrf.mxu1  ;;  %v590_v62 = vadd.f32 %v589_v49, %v448_v54  ;;  %v638_v49 = vld [vmem:[%s1842_s6 + $0x18] sm:$0xff] }
  0xe4   : > { %v619_v17 = vadd.f32 %v618_v50, %v448_v54  ;;  %v811_v50 = vld [vmem:[%s1857_s3 + $0x8] sm:$0xff] }
  0xe5   : > { %819 = vperm.xlu2 %1199, %v811_v50  }
  0xea   : > { %v592_v52 = vpop.f32.mrf.mxu0 }
  0xeb   : > { %v621_v53 = vpop.f32.mrf.mxu1  ;;  %v593_v58 = vadd.f32 %v592_v52, %v453_v55 }
  0xec   : > { %v622_v61 = vadd.f32 %v621_v53, %v453_v55  ;;  %v661_v53 = vpop.permute.xlu2 %660 }
  0xf2   : > { %v595_v56 = vpop.f32.mrf.mxu0 }
  0xf3   : > { %v624_v57 = vpop.f32.mrf.mxu1  ;;  %v596_v59 = vadd.f32 %v595_v56, %v458_v51 }
  0xf4   : > { %v625_v60 = vadd.f32 %v624_v57, %v458_v51  ;;  %v656_v56 = vpop.permute.xlu2 %655 }
  0xf5   : > { %1200 = vtanh.f32 %v596_v59 }
  0xf6   : > { %1202 = vtanh.f32 %v625_v60 }
  0xf7   : > { %1204 = vtanh.f32 %v593_v58 }
  0xf8   : > { %1206 = vtanh.f32 %v622_v61  ;;  %v651_v61 = vpop.permute.xlu0 %650 }
  0xf9   : > { %1208 = vtanh.f32 %v590_v62 }
  0xfa   : > { %1210 = vtanh.f32 %v619_v17 }
  0xfb   : > { %v1201_v26 = vpop.eup %1200  ;;  %1212 = vtanh.f32 %v587_v20 }
  0xfc   : > { %v1203_v27 = vpop.eup %1202  ;;  %1214 = vtanh.f32 %v616_v21  ;;  %688 = vmatpush.msrb.mxu0 %v1201_v26  ;;  %1141 = vmatpush.msra.mxu2 %v1201_v26  ;;  %v646_v21 = vpop.permute.xlu1 %645 }
  0xfd   : > { %v1205_v32 = vpop.eup %1204  ;;  %717 = vmatpush.msrb.mxu1 %v1203_v27  ;;  %1145 = vmatpush.msra.mxu3 %v1203_v27 }
  0xfe   : > { %v1207_v33 = vpop.eup %1206  ;;  %689 = vmatpush.msrb.mxu0 %v1205_v32  ;;  %1142 = vmatpush.msra.mxu2 %v1205_v32 }
  0xff   : > { %v1209_v38 = vpop.eup %1208  ;;  %718 = vmatpush.msrb.mxu1 %v1207_v33  ;;  %1146 = vmatpush.msra.mxu3 %v1207_v33 }
 0x100   : > { %v1211_v39 = vpop.eup %1210  ;;  %690 = vmatpush.msrb.mxu0 %v1209_v38  ;;  %1143 = vmatpush.msra.mxu2 %v1209_v38 }
 0x101   : > { %v1213_v42 = vpop.eup %1212  ;;  %719 = vmatpush.msrb.mxu1 %v1211_v39  ;;  %1147 = vmatpush.msra.mxu3 %v1211_v39 }
 0x102   : > { %v1215_v45 = vpop.eup %1214  ;;  %691 = vmatpush.msrb.mxu0 %v1213_v42  ;;  %1144 = vmatpush.msra.mxu2 %v1213_v42 }
 0x103   : > { %720 = vmatpush.msrb.mxu1 %v1215_v45  ;;  %1148 = vmatpush.msra.mxu3 %v1215_v45  ;;  %v742_v45 = vld [vmem:[%s1844_s8] sm:$0xff] }
 0x104   : > { %1083 = vmatmul.msk.f32.vlgmr.msrb.gmra.mxu0 %vm663_vm1, %v635_v43  ;;  %1084 = vmatmul.msk.f32.vlgmr.msra.gmra.mxu2 %vm663_vm1, %v636_v44 }
 0x105   : > { %1087 = vmatmul.msk.f32.vlgmr.msrb.gmra.mxu1 %vm663_vm1, %v635_v43  ;;  %1088 = vmatmul.msk.f32.vlgmr.msra.gmra.mxu3 %vm663_vm1, %v636_v44 }
 0x10c   : > { %1085 = vmatmul.msk.f32.gmra.mxu2 %vm663_vm1, %v637_v47 }
 0x10d   : > { %1089 = vmatmul.msk.f32.gmra.mxu3 %vm663_vm1, %v637_v47 }
 0x114   : > { %1086 = vmatmul.msk.f32.gmra.mxu2 %vm663_vm1, %v638_v49 }
 0x115   : > { %1090 = vmatmul.msk.f32.gmra.mxu3 %vm663_vm1, %v638_v49 }
 0x181   : > { %v693_v62 = vpop.f32.mrf.mxu0 }
 0x182   : > { %v722_v17 = vpop.f32.mrf.mxu1  ;;  %v694_v27 = vadd.f32 %v693_v62, %v646_v21 }
 0x183   : > { %v723_v32 = vadd.f32 %v722_v17, %v646_v21 }
 0x187   : > { %v696_v51 = vpop.f32.mrf.mxu2 }
 0x188   : > { %v725_v52 = vpop.f32.mrf.mxu3  ;;  %v697_v20 = vadd.f32 %v696_v51, %v651_v61 }
 0x189   : > { %v726_v26 = vadd.f32 %v725_v52, %v651_v61 }
 0x18f   : > { %v699_v54 = vpop.f32.mrf.mxu2 }
 0x190   : > { %v728_v55 = vpop.f32.mrf.mxu3  ;;  %v700_v58 = vadd.f32 %v699_v54, %v656_v56 }
 0x191   : > { %v729_v63 = vadd.f32 %v728_v55, %v656_v56 }
 0x197   : > { %v702_v57 = vpop.f32.mrf.mxu2 }
 0x198   : > { %v703_v59 = vadd.f32 %v702_v57, %v661_v53  ;;  %v731_v60 = vpop.f32.mrf.mxu3 }
 0x199   : > { %v732_v14 = vadd.f32 %v731_v60, %v661_v53 }
 0x19a   : > { %1216 = vtanh.f32 %v703_v59 }
 0x19b   : > { %1218 = vtanh.f32 %v732_v14 }
 0x19c   : > { %1220 = vtanh.f32 %v700_v58 }
 0x19d   : > { %1222 = vtanh.f32 %v729_v63 }
 0x19e   : > { %1224 = vtanh.f32 %v697_v20 }
 0x19f   : > { %1226 = vtanh.f32 %v726_v26 }
 0x1a0   : > { %v1217_v33 = vpop.eup %1216  ;;  %1228 = vtanh.f32 %v694_v27 }
 0x1a1   : > { %v1219_v38 = vpop.eup %1218  ;;  %1230 = vtanh.f32 %v723_v32  ;;  %774 = vmatpush.msrb.mxu2 %v1217_v33 }
 0x1a2   : > { %v1221_v39 = vpop.eup %1220  ;;  %797 = vmatpush.msrb.mxu3 %v1219_v38 }
 0x1a3   : > { %v1223_v42 = vpop.eup %1222  ;;  %775 = vmatpush.msrb.mxu2 %v1221_v39 }
 0x1a4   : > { %v1225_v43 = vpop.eup %1224  ;;  %798 = vmatpush.msrb.mxu3 %v1223_v42 }
 0x1a5   : > { %v1227_v44 = vpop.eup %1226  ;;  %776 = vmatpush.msrb.mxu2 %v1225_v43 }
 0x1a6   : > { %v1229_v46 = vpop.eup %1228  ;;  %799 = vmatpush.msrb.mxu3 %v1227_v44 }
 0x1a7   : > { %v1231_v47 = vpop.eup %1230  ;;  %777 = vmatpush.msrb.mxu2 %v1229_v46 }
 0x1a8   : > { %800 = vmatpush.msrb.mxu3 %v1231_v47  ;;  %1091 = vmatmul.msk.f32.vlgmr.msrb.gmra.mxu2 %vm663_vm1, %v742_v45 }
 0x1a9   : > { %1093 = vmatmul.msk.f32.vlgmr.msrb.gmra.mxu3 %vm663_vm1, %v742_v45  ;;  %1095 = vmatpush.xpose.msk.msra.mxu2 %vm460_vm0, %v1447_v0  ;;  %v808_v0 = vld [vmem:[%s1859_s1] sm:$0xff] }
 0x1aa   : > { %1113 = vmatpush.xpose.msk.msra.mxu3 %vm460_vm0, %v1450_v1  ;;  %v809_v1 = vld [vmem:[%s1859_s1 + $0x8] sm:$0xff] }
 0x1ad   : > { %1096 = vmatpush.xpose.msk.msra.mxu2 %vm460_vm0, %v1457_v2  ;;  %v749_v2 = vpop.permute.xlu2 %748 }
 0x1ae   : > { %1114 = vmatpush.xpose.msk.msra.mxu3 %vm460_vm0, %v1460_v3 }
 0x1b0   : > { %1092 = vmatmul.msk.f32.gmra.mxu2 %vm663_vm1, %v743_v48 }
 0x1b1   : > { %1094 = vmatmul.msk.f32.gmra.mxu3 %vm663_vm1, %v743_v48  ;;  %1097 = vmatpush.xpose.msk.msra.mxu2 %vm460_vm0, %v1467_v4 }
 0x1b2   : > { %1115 = vmatpush.xpose.msk.msra.mxu3 %vm460_vm0, %v1470_v5 }
 0x1b5   : > { %1098 = vmatpush.xpose.msk.msra.mxu2 %vm460_vm0, %v1477_v6 }
 0x1b6   : > { %1116 = vmatpush.xpose.msk.msra.mxu3 %vm460_vm0, %v1480_v7  ;;  %v754_v7 = vpop.permute.xlu0 %753 }
 0x1b9   : > { %1099 = vmatpush.xpose.msk.msra.mxu2 %vm460_vm0, %v1487_v8 }
 0x1ba   : > { %1117 = vmatpush.xpose.msk.msra.mxu3 %vm460_vm0, %v1490_v9 }
 0x1bd   : > { %1100 = vmatpush.xpose.msk.msra.mxu2 %vm460_vm0, %v1497_v10 }
 0x1be   : > { %1118 = vmatpush.xpose.msk.msra.mxu3 %vm460_vm0, %v1500_v11 }
 0x1c1   : > { %1101 = vmatpush.xpose.msk.msra.mxu2 %vm460_vm0, %v1507_v12 }
 0x1c2   : > { %1119 = vmatpush.xpose.msk.msra.mxu3 %vm460_vm0, %v1510_v13 }
 0x1c5   : > { %1102 = vmatpush.xpose.msk.msra.mxu2 %vm460_vm0, %v1520_v15 }
 0x1c6   : > { %1120 = vmatpush.xpose.msk.msra.mxu3 %vm460_vm0, %v1523_v16 }
 0x1c9   : > { %1103 = vmatpush.xpose.msk.msra.mxu2 %vm460_vm0, %v1530_v18 }
 0x1ca   : > { %1121 = vmatpush.xpose.msk.msra.mxu3 %vm460_vm0, %v1533_v19 }
 0x1cd   : > { %1104 = vmatpush.xpose.msk.msra.mxu2 %vm460_vm0, %v1546_v22 }
 0x1ce   : > { %1122 = vmatpush.xpose.msk.msra.mxu3 %vm460_vm0, %v1549_v23 }
 0x1d1   : > { %1105 = vmatpush.xpose.msk.msra.mxu2 %vm460_vm0, %v1556_v24 }
 0x1d2   : > { %1123 = vmatpush.xpose.msk.msra.mxu3 %vm460_vm0, %v1559_v25 }
 0x1d5   : > { %1106 = vmatpush.xpose.msk.msra.mxu2 %vm460_vm0, %v1572_v28 }
 0x1d6   : > { %1124 = vmatpush.xpose.msk.msra.mxu3 %vm460_vm0, %v1575_v29 }
 0x1d9   : > { %1107 = vmatpush.xpose.msk.msra.mxu2 %vm460_vm0, %v1582_v30 }
 0x1da   : > { %1125 = vmatpush.xpose.msk.msra.mxu3 %vm460_vm0, %v1585_v31 }
 0x1dd   : > { %1108 = vmatpush.xpose.msk.msra.mxu2 %vm460_vm0, %v1598_v34 }
 0x1de   : > { %1126 = vmatpush.xpose.msk.msra.mxu3 %vm460_vm0, %v1601_v35 }
 0x1e1   : > { %1109 = vmatpush.xpose.msk.msra.mxu2 %vm460_vm0, %v1608_v36 }
 0x1e2   : > { %1127 = vmatpush.xpose.msk.msra.mxu3 %vm460_vm0, %v1611_v37 }
 0x1e5   : > { %1110 = vmatpush.xpose.msk.msra.mxu2 %vm460_vm0, %v1624_v40 }
 0x1e6   : > { %1128 = vmatpush.xpose.msk.msra.mxu3 %vm460_vm0, %v1627_v41 }
 0x1e8   : > { %1111 = vmatmul.msk.f32.vlgmr.msra.gmra.mxu2 %vm460_vm0, %v808_v0 }
 0x1e9   : > { %1129 = vmatmul.msk.f32.vlgmr.msra.gmra.mxu3 %vm460_vm0, %v808_v0 }
 0x1f0   : > { %1112 = vmatmul.msk.f32.gmra.mxu2 %vm460_vm0, %v809_v1 }
 0x1f1   : > { %1130 = vmatmul.msk.f32.gmra.mxu3 %vm460_vm0, %v809_v1 }
 0x22b   : > { %v779_v3 = vpop.f32.mrf.mxu2 }
 0x22c   : > { %v780_v4 = vadd.f32 %v779_v3, %v749_v2  ;;  %v802_v5 = vpop.f32.mrf.mxu3 }
 0x22d   : > { %v803_v6 = vadd.f32 %v802_v5, %v749_v2 }
 0x22e   : > { %898 = vst [vmem:[%s391_s30] sm:$0xff] %v780_v4 }
 0x22f   : > { %899 = vst [vmem:[%s391_s30 + $0x8] sm:$0xff] %v803_v6 }
 0x233   : > { %v782_v8 = vpop.f32.mrf.mxu2 }
 0x234   : > { %v783_v9 = vadd.f32 %v782_v8, %v754_v7  ;;  %v805_v10 = vpop.f32.mrf.mxu3 }
 0x235   : > { %v806_v11 = vadd.f32 %v805_v10, %v754_v7 }
 0x236   : > { %900 = vst [vmem:[%s391_s30 + $0x10] sm:$0xff] %v783_v9 }
 0x237   : > { %901 = vst [vmem:[%s391_s30 + $0x18] sm:$0xff] %v806_v11 }
 0x238   : > { %1259 = shalt.err (!%p1256_p3)
}
 0x239   : > { %s1329_s30 = smov 256   ;;  %s1330_s2 = smov 1024   ;;  %v815_v12 = vpop.permute.xlu1 %814  ;;  %v883_v22 = vpop.permute.xlu0 %882 }
 0x23a   : > { %s1331_s3 = smov 16   ;;  %v822_v13 = vmul.f32 %v815_v12, %v780_v4  ;;  %v823_v16 = vmul.f32 %v815_v12, %v803_v6  ;;  %s1860_s0 = sshll.u32 %s1773_s14, 5  ;;  %v820_v28 = vpop.permute.xlu2 %819 }
 0x23b   : > { %1150 = dma.vmem_to_hbm [thread:$0]  (%p1430_p5), %s938_s16, 512, %s940_s22, %s908_s24, %s1329_s30, %s1330_s2, %s1331_s3   ;;  %v824_v29 = vmul.f32 %v820_v28, %v783_v9  ;;  %v825_v31 = vmul.f32 %v820_v28, %v806_v11 }
 0x23c   : > { %s384_s1 = scalar_lea.vmem [#allocation2], %s1860_s0  ;;  %s1861_s25 = sshll.u32 %s1413_s21, 4 }
 0x23d   : > { %s919_s16 = scalar_lea.hbm %s1846_s10, %s1861_s25  ;;  %s920_s22 = sshll.u32 %s384_s1, 4  ;;  %s921_s22 = int_to_ptr.vmem [resolvable:$true] %s920_s22 }
 0x23e   : > { %s922_s24 = sshll.u32 %s919_s16, 4  ;;  %s903_s21 = scalar_lea.sflag [#allocation3], %s1773_s14  ;;  %s923_s24 = int_to_ptr.hbm [resolvable:$true] %s922_s24 }
 0x23f   : > { %s1274_s13 = sshra.s32 %s923_s24, 4  ;;  %s1280_s29 = scalar_lea.hbm %s1846_s10, 128  ;;  %s1275_s13 = int_to_ptr.hbm [resolvable:$true] %s1274_s13 }
 0x240   : > { %s1276_s15 = scalar_lea.hbm %s1275_s13, 32  ;;  %p1281_p9 = scmp.lt.s32.totalorder %s1275_s13, %s1846_s10 }
 0x241   : > { %v888_v36 = vpop.permute.xlu1 %887  ;;  %p1277_p4 = scmp.ne.s32.totalorder %s1275_s13, %s1276_s15  ;;  %p1282_p10 = scmp.lt.s32.totalorder %s1280_s29, %s1276_s15 }
 0x243   : > { %p1278_p7 = pnand %p1277_p4, %p1430_p5  ;;  %p1283_p11 = por %p1282_p10, %p1281_p9 }
 0x245   : > { %p1279_p8 = pneg %p1278_p7 }
 0x247   : > { %p1284_p12 = pnand %p1283_p11, %p1279_p8 }
 0x26b   : > { %v849_v15 = vpop.f32.mrf.mxu2 }
 0x26c   : > { %v850_v18 = vadd.f32 %v849_v15, %v822_v13  ;;  %v872_v19 = vpop.f32.mrf.mxu3 }
 0x26d   : > { %v873_v23 = vadd.f32 %v872_v19, %v823_v16 }
 0x26e   : > { %v890_v24 = vadd.f32 %v883_v22, %v850_v18 }
 0x26f   : > { %v891_v25 = vadd.f32 %v883_v22, %v873_v23 }
 0x270   : > { %894 = vst [vmem:[%s384_s1] sm:$0xff] %v890_v24 }
 0x271   : > { %895 = vst [vmem:[%s384_s1 + $0x8] sm:$0xff] %v891_v25 }
 0x273   : > { %v852_v30 = vpop.f32.mrf.mxu2 }
 0x274   : > { %v853_v34 = vadd.f32 %v852_v30, %v824_v29  ;;  %v875_v35 = vpop.f32.mrf.mxu3 }
 0x275   : > { %v876_v37 = vadd.f32 %v875_v35, %v825_v31 }
 0x276   : > { %v892_v40 = vadd.f32 %v888_v36, %v853_v34 }
 0x277   : > { %v893_v41 = vadd.f32 %v888_v36, %v876_v37 }
 0x278   : > { %896 = vst [vmem:[%s384_s1 + $0x10] sm:$0xff] %v892_v40 }
 0x279   : > { %897 = vst [vmem:[%s384_s1 + $0x18] sm:$0xff] %v893_v41 }
 0x27a   : > { %1287 = shalt.err (!%p1284_p12)
}
 0x27b   : > { %1149 = dma.vmem_to_hbm [thread:$0]  (%p1430_p5), %s921_s22, 512, %s923_s24, %s903_s21, %s1329_s30, %s1330_s2, %s1331_s3  }
 0x27c PF: > { %p1160_p13 = scmp.ge.s32.totalorder %s1326_s20, 2  ;;  %s954_s14 = sand.u32 1, %s1314_s17  }
 0x27d   : > { %s955_s1 = scalar_lea.sflag [#allocation3], %s954_s14 }
 0x27e   : > { %p1154_p0 = pnand %p1160_p13, %p1434_p6 }
 0x280   : > { %p1155_p1 = pneg %p1154_p0 }
 0x282   : > { %1305 = dma.done.wait (%p1155_p1), %s955_s1, 512  }
 0x283   : > { %1307 = vsyncadd (%p1155_p1), %s955_s1, 4294966784  ;;  %s965_s13 = scalar_lea.sflag [#allocation5], %s954_s14 }
 0x284   : > { %1309 = dma.done.wait (%p1155_p1), %s965_s13, 512  }
 0x285   : > { %1311 = vsyncadd (%p1155_p1), %s965_s13, 4294966784  ;;  %p25_p5 = scmp.ge.s32.totalorder %s1417_s23, 6   ;;  %s1862_s17 = smov %s1318_s18 }
 0x286   : > { %s1863_s18 = smov %s1322_s19  ;;  %s1864_s19 = smov %s1428_s26 }
 0x287   : > { %s1865_s20 = smov %s1417_s23  ;;  %27 = sbr.rel (!%p25_p5) target bundleno = 10 (0xa), region = 112 }
 0x28c   :  { %971 = vsyncpa [#allocation3], 1 }
 0x28d   :  { %973 = vsyncpa [#allocation3 + $0x1], 1 }
 0x28e   :  { %974 = vsyncpa [#allocation5], 1 }
 0x28f   :  { %976 = vsyncpa [#allocation5 + $0x1], 1 }

</bundles_post_ra>
